<compile_context>
chip_gen: v6e
topology: v6e:2x2x1
jax: 0.10.0
libtpu: 0.0.40
codegen_flags: <defaults>
</compile_context>

<pallas_src>
import jax
import jax.numpy as jnp
from jax.experimental import pallas as pl
from jax.experimental.pallas import tpu as pltpu

NEGATIVE_SLOPE = 0.01
IN_FEATURES = 3
OUT_FEATURES = 3

_SUBLANE = 8          # row tile must be a multiple of the sublane width
_TARGET_TM = 32768    # ~0.75 MiB (x + out) of useful data per grid step


def _round_up(n, m):
    return ((n + m - 1) // m) * m


def _linear_leaky_kernel(x_ref, wt_ref, b_ref, o_ref):
    x = x_ref[...]                    # [tm, K]   (K = 3, natural width)
    w_t = wt_ref[...]                 # [K, N]    (pre-transposed in wrapper)
    b = b_ref[...]                    # [1, N]
    v1 = jnp.dot(x, w_t, preferred_element_type=jnp.float32) + b
    o_ref[...] = jnp.where(v1 > 0, v1, v1 * NEGATIVE_SLOPE).astype(o_ref.dtype)


def linear_leaky(x, weight, bias):
    """x: [B, in] f32, weight: [out, in] f32 (PyTorch layout), bias: [out] f32."""
    B, K = x.shape
    N = weight.shape[0]

    # Tiny (3x3 / 3) layout plumbing only; no padded copies of x, no output slice.
    w_t = weight.T.astype(jnp.float32)          # [K, N]
    b2 = bias.reshape(1, N).astype(jnp.float32)  # [1, N]

    # Row tile: big enough to amortize per-step overhead, small enough that the
    # parallel grid has >= 2 steps for v7x's two TensorCores when B is large.
    tm = min(_TARGET_TM, _round_up(pl.cdiv(B, 2), _SUBLANE))
    grid = pl.cdiv(B, tm)

    return pl.pallas_call(
        _linear_leaky_kernel,
        out_shape=jax.ShapeDtypeStruct((B, N), jnp.float32),
        grid_spec=pltpu.PrefetchScalarGridSpec(
            num_scalar_prefetch=0,
            grid=(grid,),
            in_specs=[
                pl.BlockSpec((tm, K), lambda i: (i, 0)),   # x rows stream
                pl.BlockSpec((K, N), lambda i: (0, 0)),    # weight, resident
                pl.BlockSpec((1, N), lambda i: (0, 0)),    # bias, resident
            ],
            out_specs=pl.BlockSpec((tm, N), lambda i: (i, 0)),
        ),
        compiler_params=pltpu.CompilerParams(
            dimension_semantics=("parallel",)),
    )(x, w_t, b2)


if __name__ == "__main__":
    key = jax.random.PRNGKey(0)
    kx, kw, kb = jax.random.split(key, 3)

    # Deterministic parameter init (PyTorch Linear default-like uniform bound).
    bound = 1.0 / (IN_FEATURES ** 0.5)
    weight = jax.random.uniform(
        kw, (OUT_FEATURES, IN_FEATURES), jnp.float32, -bound, bound)
    bias = jax.random.uniform(kb, (OUT_FEATURES,), jnp.float32, -bound, bound)

    # Input consistent with the module's x1 = torch.randn(1, 3); use batch=2.
    x = jax.random.normal(kx, (2, IN_FEATURES), jnp.float32)

    out = linear_leaky(x, weight, bias)
    jax.block_until_ready(out)

    # Reference check in plain JAX.
    v1 = x @ weight.T + bias
    ref = jnp.where(v1 > 0, v1, v1 * NEGATIVE_SLOPE)
    assert out.shape == ref.shape
    assert jnp.allclose(out, ref, atol=1e-5, rtol=1e-5)

    print("KERNEL_OK")
</pallas_src>

<mosaic_0001>
module attributes {stable_mosaic.version = 11 : i64} {
  func.func @_linear_leaky_kernel(%arg0: i32, %arg1: memref<8x3xf32, #tpu.memory_space<vmem>>, %arg2: memref<3x3xf32, #tpu.memory_space<vmem>>, %arg3: memref<1x3xf32, #tpu.memory_space<vmem>>, %arg4: memref<8x3xf32, #tpu.memory_space<vmem>>) attributes {dimension_semantics = [#tpu.dimension_semantics<parallel>], iteration_bounds = array<i64: 1>, scalar_prefetch = 0 : i64, scratch_operands = 0 : i64, tpu.core_type = #tpu.core_type<tc>, window_params = [{transform_indices = @transform_0, window_bounds = array<i64: 8, 3>}, {pipeline_mode = #tpu.pipeline_mode<synchronous>, transform_indices = @transform_1, window_bounds = array<i64: 3, 3>}, {pipeline_mode = #tpu.pipeline_mode<synchronous>, transform_indices = @transform_2, window_bounds = array<i64: 1, 3>}, {transform_indices = @transform_3, window_bounds = array<i64: 8, 3>}]} {
    %c0 = arith.constant 0 : index
    %c0_0 = arith.constant 0 : index
    %0 = vector.load %arg1[%c0, %c0_0] : memref<8x3xf32, #tpu.memory_space<vmem>>, vector<8x3xf32>
    %c0_1 = arith.constant 0 : index
    %c0_2 = arith.constant 0 : index
    %1 = vector.load %arg2[%c0_1, %c0_2] : memref<3x3xf32, #tpu.memory_space<vmem>>, vector<3x3xf32>
    %c0_3 = arith.constant 0 : index
    %c0_4 = arith.constant 0 : index
    %2 = vector.load %arg3[%c0_3, %c0_4] : memref<1x3xf32, #tpu.memory_space<vmem>>, vector<1x3xf32>
    %cst = arith.constant dense<0.000000e+00> : vector<8x3xf32>
    %3 = tpu.matmul %0, %1, %cst {dimension_numbers = #tpu.dot_dimension_numbers<[1], [0], [0], [1], [0, 0, 1, 1], [], []>} : vector<8x3xf32>, vector<3x3xf32>, vector<8x3xf32> -> vector<8x3xf32>
    %4 = vector.broadcast %2 : vector<1x3xf32> to vector<8x3xf32>
    %5 = arith.addf %3, %4 : vector<8x3xf32>
    %cst_5 = arith.constant 0.000000e+00 : f32
    %6 = vector.broadcast %cst_5 : f32 to vector<8x3xf32>
    %7 = arith.cmpf ogt, %5, %6 : vector<8x3xf32>
    %cst_6 = arith.constant 0.00999999977 : f32
    %8 = vector.broadcast %cst_6 : f32 to vector<8x3xf32>
    %9 = arith.mulf %5, %8 : vector<8x3xf32>
    %10 = arith.select %7, %5, %9 : vector<8x3xi1>, vector<8x3xf32>
    %c0_7 = arith.constant 0 : index
    %c0_8 = arith.constant 0 : index
    %11 = vector.load %arg4[%c0_7, %c0_8] : memref<8x3xf32, #tpu.memory_space<vmem>>, vector<8x3xf32>
    tpu.vector_store %arg4[%c0_7, %c0_8], %10 {strides = array<i32>} : memref<8x3xf32, #tpu.memory_space<vmem>>, vector<8x3xf32>,
    return
  }
  func.func @transform_0(%arg0: i32) -> (i32, i32) {
    %c0_i32 = arith.constant 0 : i32
    %c0_i32_0 = arith.constant 0 : i32
    return %arg0, %c0_i32 : i32, i32
  }
  func.func @transform_1(%arg0: i32) -> (i32, i32) {
    %c0_i32 = arith.constant 0 : i32
    %c0_i32_0 = arith.constant 0 : i32
    %c0_i32_1 = arith.constant 0 : i32
    return %c0_i32, %c0_i32_0 : i32, i32
  }
  func.func @transform_2(%arg0: i32) -> (i32, i32) {
    %c0_i32 = arith.constant 0 : i32
    %c0_i32_0 = arith.constant 0 : i32
    %c0_i32_1 = arith.constant 0 : i32
    return %c0_i32, %c0_i32_0 : i32, i32
  }
  func.func @transform_3(%arg0: i32) -> (i32, i32) {
    %c0_i32 = arith.constant 0 : i32
    %c0_i32_0 = arith.constant 0 : i32
    return %arg0, %c0_i32 : i32, i32
  }
}

</mosaic_0001>

<bundles_post_ra>
// kernel: tpu_custom_call.1
= control target key start
LH: loop header
LB: loop body
LE: loop exit
PB: predicated region body
PF: predicated region fallthrough
CT: control target
= control target key end

     0   :  { %8 = vsyncpa [#allocation3], 0  ;;  %s278_s0 = inlined_call_operand.hbm [shape: f32[2,3], index: 0, kind: input, shape index: {}]   ;;  %s279_s1 = inlined_call_operand.hbm [shape: f32[3,3], index: 1, kind: input, shape index: {}]   ;;  %s280_s2 = inlined_call_operand.vmem [shape: f32[1,3], index: 2, kind: input, shape index: {}]   ;;  %s281_s3 = inlined_call_operand.hbm [shape: f32[2,3], index: 3, kind: output, shape index: {}]  }
   0x1   :  { %9 = vsyncpa [#allocation6], 0 }
   0x2   :  { %10 = vsyncpa [#allocation4], 0 }
   0x3   :  { %15 = vsyncadd [#allocation3], 96  ;;  %s233_s12 = smov [#allocation2]  }
   0x4   :  { %s16_s13 = sshll.u32 %s233_s12, 4  ;;  %s17_s13 = int_to_ptr.vmem [resolvable:$true] %s16_s13 }
   0x5   :  { %s175_s14 = scalar_lea.vmem %s17_s13, 32  ;;  %s179_s15 = scalar_lea.vmem %s17_s13, 128 }
   0x6   :  { %p176_p0 = scmp.ne.s32.totalorder %s17_s13, %s175_s14  ;;  %p180_p1 = scmp.lt.s32.totalorder %s17_s13, %s17_s13 }
   0x7   :  { %p181_p2 = scmp.lt.s32.totalorder %s179_s15, %s175_s14 }
   0x9   :  { %p182_p3 = por %p181_p2, %p180_p1 }
   0xb   :  { %p183_p4 = pnand %p182_p3, %p176_p0 }
   0xd   :  { %186 = shalt.err (!%p183_p4)
}
   0xe   :  { %s234_s16 = smov 32   ;;  %s235_s17 = smov 2  }
   0xf   :  { %22 = dma.hbm_to_vmem [thread:$0]  %s278_s0, 32, %s17_s13, [#allocation3], %s234_s16, %s234_s16, %s235_s17  }
  0x10   :  { %s236_s20 = smov [#allocation5]  }
  0x11   :  { %s29_s21 = sshll.u32 %s236_s20, 4  ;;  %s30_s21 = int_to_ptr.vmem [resolvable:$true] %s29_s21 }
  0x12   :  { %s195_s22 = scalar_lea.vmem %s30_s21, 64  ;;  %p200_p6 = scmp.lt.s32.totalorder %s30_s21, %s30_s21 }
  0x13   :  { %p196_p5 = scmp.ne.s32.totalorder %s30_s21, %s195_s22  ;;  %p201_p7 = scmp.lt.s32.totalorder %s195_s22, %s195_s22 }
  0x15   :  { %p202_p8 = por %p201_p7, %p200_p6 }
  0x17   :  { %p203_p9 = pnand %p202_p8, %p196_p5 }
  0x19   :  { %206 = shalt.err (!%p203_p9)
}
  0x1a   :  { %32 = dma.hbm_to_vmem [thread:$0]  %s279_s1, 64, %s30_s21, [#allocation6]  }
  0x1b   :  { %227 = dma.done.wait [#allocation3], 128  }
  0x1c   :  { %228 = vsyncadd [#allocation3], 4294967168 }
  0x1d   :  { %229 = dma.done.wait [#allocation6], 64  }
  0x1e   :  { %230 = vsyncadd [#allocation6], 4294967232  ;;  %v237_v0 = vmov 0.0   ;;  %vm238_vm0 = vmmov 0   ;;  %vm54_vm1 = vcmask 1042432   ;;  %vm50_vm2 = vcmask 23552  }
  0x1f   :  { %155 = vmatprep.subr.mxu0 %v237_v0  ;;  %157 = vmatprep.mubr.msk.f32.mxu0 %vm238_vm0, %v237_v0  ;;  %v42_v1 = vld [vmem:[#allocation5] sm:$0x7]  ;;  %v41_v2 = vld [vmem:[#allocation2] sm:$0xff] }
  0x20   :  { %156 = vmatpush3.msk.msra.mxu0 %vm54_vm1, %v42_v1  ;;  %v150_v3 = vld [vmem:[%s280_s2] ss:$0 sm:$0xff] }
  0x21   :  { %158 = vmatmul.mubr.msk.f32.vlgmr.msra.gmra.mxu0 %vm50_vm2, %v41_v2 }
  0xe1   :  { %v124_v4 = vpop.f32.mrf.mxu0 }
  0xe2   :  { %v125_v5 = vadd.f32 %v150_v3, %v124_v4 }
  0xe3   :  { %v159_v6 = vpop.f32.mrf.mxu0 }
  0xe4   :  { %vm128_vm3 = vcmp.gt.f32.partialorder %v125_v5, 0.0  ;;  %v129_v7 = vmul.f32 0.01, %v125_v5 }
  0xe6   :  { %v130_v8 = vsel %vm128_vm3, %v125_v5, %v129_v7 }
  0xe7   :  { %131 = vst.msk [vmem:[#allocation7] sm:$0xff] %vm50_vm2, %v130_v8 }
  0xe8   :  { %136 = vsyncadd [#allocation4], 96  ;;  %s239_s1 = smov [#allocation7]  }
  0xe9   :  { %s137_s26 = sshll.u32 %s239_s1, 4  ;;  %s138_s26 = int_to_ptr.vmem [resolvable:$true] %s137_s26 }
  0xea   :  { %s207_s27 = scalar_lea.vmem %s138_s26, 32  ;;  %s211_s28 = scalar_lea.vmem %s138_s26, 128 }
  0xeb   :  { %p208_p10 = scmp.ne.s32.totalorder %s138_s26, %s207_s27  ;;  %p212_p11 = scmp.lt.s32.totalorder %s138_s26, %s138_s26 }
  0xec   :  { %p213_p12 = scmp.lt.s32.totalorder %s211_s28, %s207_s27 }
  0xee   :  { %p214_p13 = por %p213_p12, %p212_p11 }
  0xf0   :  { %p215_p0 = pnand %p214_p13, %p208_p10 }
  0xf2   :  { %218 = shalt.err (!%p215_p0)
}
  0xf3   :  { %143 = dma.vmem_to_hbm [thread:$0]  %s138_s26, 32, %s281_s3, [#allocation4], %s234_s16, %s234_s16, %s235_s17  }
  0xf4   :  { %231 = dma.done.wait [#allocation4], 128  }
  0xf5   :  { %232 = vsyncadd [#allocation4], 4294967168 }
  0xf6   :  { %147 = vsyncpa [#allocation3], 1 }
  0xf7   :  { %148 = vsyncpa [#allocation6], 1 }
  0xf8   :  { %149 = vsyncpa [#allocation4], 1 }

</bundles_post_ra>
